<compile_context>
chip_gen: v7x
topology: tpu7x:2x2x1
jax: 0.10.0
libtpu: 0.0.40
codegen_flags: <defaults>
</compile_context>

<pallas_src>
import jax
import jax.numpy as jnp
from jax.experimental import pallas as pl
from jax.experimental.pallas import tpu as pltpu


def _fused_kernel(w_ref, b_ref, x_ref, o_ref):
    # w_ref: (Cout, Cin)   bf16 folded weight (BN1 & BN2 scales already folded in)
    # b_ref: (Cout, 1)     f32  folded bias   (BN1 shift pushed through conv + BN2 shift)
    # x_ref: (1, Cin, BM)  f32  input slab in NCHW-flattened layout
    # o_ref: (1, Cout, BM) f32  output slab (lane-dense: BM is a multiple of 128)
    x = x_ref[0].astype(jnp.bfloat16)                                  # cast in VMEM only
    acc = jnp.dot(w_ref[...], x, preferred_element_type=jnp.float32)   # single MXU matmul
    acc = acc + b_ref[...]                                             # bias, broadcast over lanes
    o_ref[0] = jnp.maximum(acc, 0.0).astype(o_ref.dtype)               # ReLU epilogue


def _pick_block_m(hw, max_block=2048):
    """Largest multiple of 128 that divides hw (capped); fall back to full hw."""
    if hw % 128 != 0:
        return hw
    bm = min(hw, max_block)
    bm = (bm // 128) * 128
    while hw % bm != 0:
        bm -= 128
    return bm


def bn_conv1x1_bn_relu_pallas(x, conv_w, bn1, bn2, *, eps=1e-5, block_m=None):
    """Fused eval-mode forward of bn_conv1x1_bn_relu (groups=1, bias=False conv).

    x:      (N, Cin, H, W)    float32, PyTorch NCHW layout
    conv_w: (Cout, Cin, 1, 1) float32
    bn1/bn2: dicts with per-channel 'gamma', 'beta', 'mean', 'var' (float32)
    returns (N, Cout, H, W) float32
    """
    N, Cin, H, W = x.shape
    Cout = conv_w.shape[0]
    assert conv_w.shape == (Cout, Cin, 1, 1), "only groups=1, kernel_size=1 supported"
    HW = H * W

    # ---- Fold BN1 (pre-conv) and BN2 (post-conv) into the 1x1 conv (exact math). ----
    w = conv_w.reshape(Cout, Cin).astype(jnp.float32)
    s1 = bn1["gamma"] * jax.lax.rsqrt(bn1["var"] + eps)          # (Cin,)
    b1 = bn1["beta"] - bn1["mean"] * s1                          # (Cin,)
    s2 = bn2["gamma"] * jax.lax.rsqrt(bn2["var"] + eps)          # (Cout,)
    b2 = bn2["beta"] - bn2["mean"] * s2                          # (Cout,)
    w_fused = (w * s1[None, :]) * s2[:, None]                    # (Cout, Cin)
    bias_fused = s2 * (w @ b1) + b2                              # (Cout,)

    w_bf16 = w_fused.astype(jnp.bfloat16)
    bias = bias_fused.reshape(Cout, 1).astype(jnp.float32)

    # ---- Lane-dense spatial tiling over the flattened H*W axis. ----
    if block_m is None:
        block_m = _pick_block_m(HW)
    assert HW % block_m == 0, "block_m must divide H*W"
    x_flat = x.reshape(N, Cin, HW)                               # free reshape (contiguous)

    out_flat = pl.pallas_call(
        _fused_kernel,
        out_shape=jax.ShapeDtypeStruct((N, Cout, HW), x.dtype),
        grid_spec=pltpu.PrefetchScalarGridSpec(
            num_scalar_prefetch=0,
            grid=(N, HW // block_m),
            in_specs=[
                pl.BlockSpec((Cout, Cin), lambda n, m: (0, 0)),          # folded weight
                pl.BlockSpec((Cout, 1), lambda n, m: (0, 0)),            # folded bias
                pl.BlockSpec((1, Cin, block_m), lambda n, m: (n, 0, m)),  # input slab
            ],
            out_specs=pl.BlockSpec((1, Cout, block_m), lambda n, m: (n, 0, m)),
        ),
        compiler_params=pltpu.CompilerParams(
            dimension_semantics=("parallel", "parallel"),
        ),
    )(w_bf16, bias, x_flat)

    return out_flat.reshape(N, Cout, H, W)


if __name__ == "__main__":
    key = jax.random.PRNGKey(0)
    ks = jax.random.split(key, 10)

    # Small shapes consistent with the module: bn_conv1x1_bn_relu(in_planes=4, out_planes=8)
    N, Cin, Cout, H, W = 2, 4, 8, 16, 16
    eps = 1e-5

    x = jax.random.normal(ks[0], (N, Cin, H, W), dtype=jnp.float32)

    # Conv2d(kernel_size=1, bias=False) weight, kaiming-uniform-ish init.
    fan_in = Cin * 1 * 1
    bound = (1.0 / fan_in) ** 0.5
    conv_w = jax.random.uniform(ks[1], (Cout, Cin, 1, 1), jnp.float32, -bound, bound)

    # Non-trivial BatchNorm parameters (eval-mode running stats).
    bn1 = dict(
        gamma=jax.random.uniform(ks[2], (Cin,), jnp.float32, 0.5, 1.5),
        beta=0.1 * jax.random.normal(ks[3], (Cin,), jnp.float32),
        mean=0.1 * jax.random.normal(ks[4], (Cin,), jnp.float32),
        var=jax.random.uniform(ks[5], (Cin,), jnp.float32, 0.5, 1.5),
    )
    bn2 = dict(
        gamma=jax.random.uniform(ks[6], (Cout,), jnp.float32, 0.5, 1.5),
        beta=0.1 * jax.random.normal(ks[7], (Cout,), jnp.float32),
        mean=0.1 * jax.random.normal(ks[8], (Cout,), jnp.float32),
        var=jax.random.uniform(ks[9], (Cout,), jnp.float32, 0.5, 1.5),
    )

    # block_m=128 exercises the spatial-tiling grid axis (grid = (N, H*W/128) = (2, 2)).
    out = bn_conv1x1_bn_relu_pallas(x, conv_w, bn1, bn2, eps=eps, block_m=128)
    out = jax.block_until_ready(out)

    # Unfused f32 reference: BN -> 1x1 conv -> BN -> ReLU.
    def _bn(z, p):
        scale = (p["gamma"] * jax.lax.rsqrt(p["var"] + eps))[None, :, None, None]
        return (z - p["mean"][None, :, None, None]) * scale + p["beta"][None, :, None, None]

    xn = _bn(x, bn1)
    z = jax.lax.conv_general_dilated(
        xn, conv_w, window_strides=(1, 1), padding="VALID",
        dimension_numbers=("NCHW", "OIHW", "NCHW"))
    ref = jnp.maximum(_bn(z, bn2), 0.0)
    ref = jax.block_until_ready(ref)

    assert out.shape == (N, Cout, H, W)
    # bf16 MXU operands with f32 accumulation -> small quantization error vs f32 ref.
    assert jnp.allclose(out, ref, atol=5e-2, rtol=5e-2), float(jnp.max(jnp.abs(out - ref)))

    print("KERNEL_OK")
</pallas_src>

<mosaic_0001>
module attributes {stable_mosaic.version = 11 : i64} {
  func.func @_fused_kernel(%arg0: i32, %arg1: i32, %arg2: memref<8x4xbf16, #tpu.memory_space<vmem>>, %arg3: memref<8x1xf32, #tpu.memory_space<vmem>>, %arg4: memref<1x4x128xf32, #tpu.memory_space<vmem>>, %arg5: memref<1x8x128xf32, #tpu.memory_space<vmem>>) attributes {dimension_semantics = [#tpu.dimension_semantics<parallel>, #tpu.dimension_semantics<parallel>], iteration_bounds = array<i64: 2, 2>, scalar_prefetch = 0 : i64, scratch_operands = 0 : i64, tpu.core_type = #tpu.core_type<tc>, window_params = [{pipeline_mode = #tpu.pipeline_mode<synchronous>, transform_indices = @transform_0, window_bounds = array<i64: 8, 4>}, {pipeline_mode = #tpu.pipeline_mode<synchronous>, transform_indices = @transform_1, window_bounds = array<i64: 8, 1>}, {transform_indices = @transform_2, window_bounds = array<i64: 1, 4, 128>}, {transform_indices = @transform_3, window_bounds = array<i64: 1, 8, 128>}]} {
    %c0 = arith.constant 0 : index
    %c0_0 = arith.constant 0 : index
    %c0_1 = arith.constant 0 : index
    %0 = vector.load %arg4[%c0, %c0_0, %c0_1] : memref<1x4x128xf32, #tpu.memory_space<vmem>>, vector<1x4x128xf32>
    %1 = vector.shape_cast %0 : vector<1x4x128xf32> to vector<4x128xf32>
    %2 = arith.truncf %1 : vector<4x128xf32> to vector<4x128xbf16>
    %c0_2 = arith.constant 0 : index
    %c0_3 = arith.constant 0 : index
    %3 = vector.load %arg2[%c0_2, %c0_3] : memref<8x4xbf16, #tpu.memory_space<vmem>>, vector<8x4xbf16>
    %cst = arith.constant dense<0.000000e+00> : vector<8x128xf32>
    %4 = tpu.matmul %3, %2, %cst {dimension_numbers = #tpu.dot_dimension_numbers<[1], [0], [0], [1], [0, 0, 1, 1], [], []>} : vector<8x4xbf16>, vector<4x128xbf16>, vector<8x128xf32> -> vector<8x128xf32>
    %c0_4 = arith.constant 0 : index
    %c0_5 = arith.constant 0 : index
    %5 = vector.load %arg3[%c0_4, %c0_5] : memref<8x1xf32, #tpu.memory_space<vmem>>, vector<8x1xf32>
    %6 = vector.broadcast %5 : vector<8x1xf32> to vector<8x128xf32>
    %7 = arith.addf %4, %6 : vector<8x128xf32>
    %cst_6 = arith.constant 0.000000e+00 : f32
    %8 = vector.broadcast %cst_6 : f32 to vector<8x128xf32>
    %9 = arith.maximumf %7, %8 : vector<8x128xf32>
    %c0_7 = arith.constant 0 : index
    %c0_8 = arith.constant 0 : index
    %c0_9 = arith.constant 0 : index
    %10 = vector.load %arg5[%c0_7, %c0_8, %c0_9] : memref<1x8x128xf32, #tpu.memory_space<vmem>>, vector<1x8x128xf32>
    %11 = vector.shape_cast %10 : vector<1x8x128xf32> to vector<8x128xf32>
    %12 = vector.shape_cast %9 : vector<8x128xf32> to vector<1x8x128xf32>
    tpu.vector_store %arg5[%c0_7, %c0_8, %c0_9], %12 {strides = array<i32>} : memref<1x8x128xf32, #tpu.memory_space<vmem>>, vector<1x8x128xf32>,
    return
  }
  func.func @transform_0(%arg0: i32, %arg1: i32) -> (i32, i32) {
    %c0_i32 = arith.constant 0 : i32
    %c0_i32_0 = arith.constant 0 : i32
    %c0_i32_1 = arith.constant 0 : i32
    return %c0_i32, %c0_i32_0 : i32, i32
  }
  func.func @transform_1(%arg0: i32, %arg1: i32) -> (i32, i32) {
    %c0_i32 = arith.constant 0 : i32
    %c0_i32_0 = arith.constant 0 : i32
    %c0_i32_1 = arith.constant 0 : i32
    return %c0_i32, %c0_i32_0 : i32, i32
  }
  func.func @transform_2(%arg0: i32, %arg1: i32) -> (i32, i32, i32) {
    %c0_i32 = arith.constant 0 : i32
    %c0_i32_0 = arith.constant 0 : i32
    return %arg0, %c0_i32, %arg1 : i32, i32, i32
  }
  func.func @transform_3(%arg0: i32, %arg1: i32) -> (i32, i32, i32) {
    %c0_i32 = arith.constant 0 : i32
    %c0_i32_0 = arith.constant 0 : i32
    return %arg0, %c0_i32, %arg1 : i32, i32, i32
  }
}

</mosaic_0001>

<bundles_post_ra>
// kernel: tpu_custom_call.1
= control target key start
LH: loop header
LB: loop body
LE: loop exit
PB: predicated region body
PF: predicated region fallthrough
CT: control target
= control target key end

     0   :  { %8 = vsyncpa [#allocation3], 0  ;;  %s708_s0 = inlined_call_operand.vmem [shape: bf16[8,4], index: 0, kind: input, shape index: {}]   ;;  %s709_s1 = inlined_call_operand.vmem [shape: f32[8,1], index: 1, kind: input, shape index: {}]   ;;  %s710_s2 = inlined_call_operand.vmem [shape: f32[2,4,256], index: 2, kind: input, shape index: {}]   ;;  %s711_s3 = inlined_call_operand.hbm [shape: f32[2,8,256], index: 3, kind: output, shape index: {}]  }
   0x1   :  { %10 = vsyncpa [#allocation3 + $0x1], 0  ;;  %s565_s12 = smov 0   ;;  %s567_s13 = smov 0  }
   0x2   :  { %s569_s14 = smov 0   ;;  %s571_s15 = smov 0  }
   0x3   :  { %s573_s16 = smov 0   ;;  %s575_s17 = smov 0  }
   0x4   :  { %s577_s18 = smov 0   ;;  %s579_s19 = smov 0  }
   0x5 LB: > { %s348_s20 = sadd.s32 4294967295, %s539_s19   ;;  %s349_s21 = sadd.s32 4294967294, %s539_s19   ;;  %s539_s19 = sphi %s579_s19, %s16_s19   ;;  %s535_s18 = sphi %s577_s18, %s720_s18   ;;  %s531_s17 = sphi %s575_s17, %s719_s17   ;;  %s527_s16 = sphi %s573_s16, %s718_s16   ;;  %s523_s15 = sphi %s571_s15, %s717_s15   ;;  %s519_s14 = sphi %s569_s14, %s716_s14   ;;  %s515_s13 = sphi %s567_s13, %s715_s13   ;;  %s511_s12 = sphi %s565_s12, %s714_s12  }
   0x6   : > { %s25_s22 = sadd.s32 1, %s531_s17  ;;  %s28_s23 = sadd.s32 1, %s535_s18 }
   0x7   : > { %p26_p0 = scmp.ge.s32.totalorder %s25_s22, 2  ;;  %p117_p1 = scmp.ne.s32.totalorder %s519_s14, %s515_s13 }
   0x8   : > { %p118_p2 = scmp.eq.s32.totalorder %s348_s20, 3  ;;  %p123_p5 = scmp.ne.s32.totalorder %s515_s13, %s511_s12 }
   0x9   : > { %s722_s22 = smov (%p26_p0, %s25_s22), 0  ;;  %s724_s23 = smov (!%p26_p0, %s28_s23), %s535_s18 }
   0xa   : > { %s103_s24 = ssub.s32 %s531_s17, %s722_s22  ;;  %p616_p3 = por %p118_p2, %p117_p1 }
   0xb   : > { %p30_p4 = scmp.ge.s32.totalorder %s724_s23, 2  ;;  %p124_p6 = scmp.eq.s32.totalorder %s349_s21, 3 }
   0xc   : > { %p352_p7 = scmp.ge.s32.totalorder %s539_s19, 1  ;;  %p159_p9 = scmp.lt.s32.totalorder %s539_s19, 5 }
   0xd   : > { %s726_s23 = smov (%p30_p4, %s724_s23), 0  ;;  %p625_p8 = por %p124_p6, %p123_p5 }
   0xe   : > { %s102_s27 = ssub.s32 %s535_s18, %s726_s23  ;;  %s107_s28 = sadd.s32 1, %s519_s14 }
   0xf   : > { %s104_s29 = sor.u32 %s103_s24, %s102_s27  ;;  %p160_p10 = pnand %p352_p7, %p159_p9 }
  0x10   : > { %p105_p11 = scmp.eq.s32.totalorder %s104_s29, 0  ;;  %p186_p12 = scmp.lt.s32.totalorder (!%p160_p10), %s527_s16, 1  ;;  %v541_v0 = vmov (!%p160_p10), 0.0   ;;  %vm542_vm0 = vmmov (!%p160_p10), 0   ;;  %v198_v1 = vld [vmem:[%s709_s1] sm:$0xff] (!%p160_p10)  ;;  %v543_v2 = vmov (!%p160_p10), 0  }
  0x11   : > { %163 = sbr.rel (%p160_p10) target bundleno = 267 (0x10b), region = 32  ;;  %p188_p13 = scmp.lt.s32.totalorder (!%p160_p10), %s523_s15, 1  ;;  %364 = vmatprep.subr.bf16.mxu0 (!%p160_p10), %v541_v0  ;;  %366 = vmatprep.mubr.msk.bf16.mxu0 (!%p160_p10), %vm542_vm0, %v541_v0  ;;  %vm208_vm1 = vcmask (!%p160_p10), 1041408   ;;  %v197_v6 = vld [vmem:[%s708_s0] sm:$0xf] (!%p160_p10)  ;;  %vm204_vm2 = vcmask (!%p160_p10), 31744  }
  0x12   : > { %s634_s30 = scalar_select %p105_p11, %s519_s14, %s107_s28  }
  0x13   : > { %444 = vset.pattern.permute.xlu0 (!%p160_p10), %v543_v2  ;;  %s183_s28 = sand.u32 (!%p160_p10), 1, %s515_s13   ;;  %s358_s4 = sshll.u32 (!%p160_p10), %s527_s16, 1 }
  0x14   : > { %201 = vperm.xlu0 (!%p160_p10), %444, %v198_v1   ;;  %s353_s29 = sshll.u32 (!%p160_p10), %s183_s28, 3  ;;  %s266_s5 = sadd.s32 (!%p160_p10), %s523_s15, %s358_s4 }
  0x15   : > { %s544_s20 = smov (!%p160_p10), [#allocation2]  }
  0x18   : > { %s187_s6 = scalar_select %p186_p12, %s527_s16, 1 }
  0x19   : > { %s189_s7 = scalar_select %p188_p13, %s523_s15, 1 }
  0x1a   : > { %s354_s8 = sshll.u32 %s187_s6, 1  ;;  %s359_s6 = sshll.u32 %s266_s5, 7 }
  0x1b   : > { %s191_s9 = sadd.s32 %s354_s8, %s189_s7  ;;  %s185_s7 = scalar_lea.vmem [#allocation2], %s353_s29 }
  0x1c   : > { %s355_s10 = sshll.u32 %s191_s9, 2  ;;  %s270_s8 = sshll.u32 %s185_s7, 4  ;;  %s657_s8 = int_to_ptr.vmem [resolvable:$true] %s270_s8 }
  0x1d   : > { %s193_s21 = scalar_lea.vmem %s710_s2, %s355_s10  ;;  %s655_s11 = scalar_lea.hbm %s711_s3, %s359_s6 }
  0x1e   : > { %v195_v3 = vld [vmem:[%s193_s21] sm:$0xf]  ;;  %s255_s15 = scalar_lea.sflag [#allocation3], %s183_s28  ;;  %s445_s16 = scalar_lea.vmem %s657_s8, 128 }
  0x1f   : > { %v196_v4 = vpack.c.bf16 %v195_v3, %v195_v3  ;;  %p446_p0 = scmp.ne.s32.totalorder %s657_s8, %s445_s16  ;;  %s449_s21 = sshll.u32 %s544_s20, 4  ;;  %s450_s21 = int_to_ptr.vmem [resolvable:$false] %s449_s21 }
  0x20   : > { %s451_s24 = scalar_lea.vmem %s450_s21, 256  ;;  %p452_p4 = scmp.lt.s32.totalorder %s657_s8, %s450_s21 }
  0x21   : > { %v210_v5 = vsel %vm208_vm1, %v196_v4, 0  ;;  %p447_p1 = pnand %p446_p0, %p616_p3  ;;  %p453_p5 = scmp.lt.s32.totalorder %s451_s24, %s445_s16 }
  0x22   : > { %365 = vmatpush3.bf16.msra.mxu0 %v210_v5 }
  0x23   : > { %p448_p2 = pneg %p447_p1  ;;  %p454_p6 = por %p453_p5, %p452_p4 }
  0x25   : > { %367 = vmatmul.mubr.msk.bf16.vlgmr.msra.gmra.mrb[0].mxu0 %vm204_vm2, %v197_v6  ;;  %p455_p7 = pnand %p454_p6, %p448_p2 }
  0x93   : > { %v202_v7 = vpop.permute.xlu0 %201 }
  0xf8   : > { %v246_v8 = vpop.f32.mrb[0].mxu0 }
  0xf9   : > { %v247_v9 = vadd.f32 %v246_v8, %v202_v7  ;;  %v368_v10 = vpop.f32.mrb[1].mxu0 }
  0xfa   : > { %v249_v11 = vpop.f32.mrb[2].mxu0 }
  0xfb   : > { %v252_v12 = vmax.f32 %v247_v9, 0.0  ;;  %v369_v13 = vpop.f32.mrb[3].mxu0 }
  0xfd   : > { %253 = vst [vmem:[%s185_s7] sm:$0xff] %v252_v12 }
  0xfe   : > { %458 = shalt.err (!%p455_p7)
}
  0xff   : > { %s459_s27 = scalar_lea.hbm %s655_s11, 128  ;;  %s463_s4 = scalar_lea.hbm %s711_s3, 512 }
 0x100   : > { %p460_p9 = scmp.ne.s32.totalorder %s655_s11, %s459_s27  ;;  %p464_p12 = scmp.lt.u32.totalorder %s655_s11, %s711_s3 }
 0x101   : > { %p465_p13 = scmp.lt.u32.totalorder %s463_s4, %s459_s27  ;;  %p467_p1 = scmp.lt.u32.totalorder %s459_s27, %s655_s11 }
 0x102   : > { %p461_p10 = pnand %p460_p9, %p616_p3 }
 0x103   : > { %p466_p0 = por %p465_p13, %p464_p12 }
 0x104   : > { %p462_p11 = pneg %p461_p10 }
 0x105   : > { %p468_p2 = por %p467_p1, %p466_p0 }
 0x107   : > { %p469_p4 = pnand %p468_p2, %p462_p11 }
 0x109   : > { %472 = shalt.err (!%p469_p4)
}
 0x10a   : > { %370 = dma.vmem_to_hbm [thread:$0]  (%p616_p3), %s657_s8, 128, %s655_s11, %s255_s15  }
 0x10b PF: > { %p376_p5 = scmp.ge.s32.totalorder %s539_s19, 2  ;;  %s282_s7 = sand.u32 1, %s511_s12  }
 0x10c   : > { %s283_s9 = scalar_lea.sflag [#allocation3], %s282_s7 }
 0x10d   : > { %p373_p6 = pnand %p376_p5, %p625_p8 }
 0x10f   : > { %506 = dma.done.wait (!%p373_p6), %s283_s9, 128  }
 0x110   : > { %508 = vsyncadd (!%p373_p6), %s283_s9, 4294967168  ;;  %s16_s19 = sadd.s32 1, %s539_s19   ;;  %s714_s12 = smov %s515_s13 }
 0x111   : > { %p13_p7 = scmp.ge.s32.totalorder %s16_s19, 6   ;;  %s715_s13 = smov %s519_s14 }
 0x112   : > { %s716_s14 = smov %s634_s30  ;;  %s717_s15 = smov %s531_s17 }
 0x113   : > { %s718_s16 = smov %s535_s18  ;;  %s719_s17 = smov %s722_s22 }
 0x114   : > { %s720_s18 = smov %s726_s23  ;;  %15 = sbr.rel (!%p13_p7) target bundleno = 5 (0x5), region = 67 }
 0x11b   :  { %288 = vsyncpa [#allocation3], 1 }
 0x11c   :  { %290 = vsyncpa [#allocation3 + $0x1], 1 }

</bundles_post_ra>
